<compile_context>
chip_gen: v5e
topology: v5e:2x2
jax: 0.10.0
libtpu: 0.0.40
codegen_flags: <defaults>
</compile_context>

<pallas_src>
import functools

import jax
import jax.numpy as jnp
from jax.experimental import pallas as pl
from jax.experimental.pallas import tpu as pltpu


def _round_up(v, m):
    return ((v + m - 1) // m) * m


def _gaussian_mlp_kernel(x_ref, w1_ref, b1_ref, w2_ref, b2_ref, w3_ref, b3_ref,
                         out_ref, *, half):
    cd = w1_ref.dtype
    # fc1 + relu   (dropout has p=0 -> identity, omitted)
    x = x_ref[...].astype(cd)                      # in-kernel cast (avoids extra HBM pass on x)
    h = jnp.dot(x, w1_ref[...], preferred_element_type=jnp.float32) + b1_ref[...]
    h = jnp.maximum(h, 0.0).astype(cd)

    # fc2 + relu
    h = jnp.dot(h, w2_ref[...], preferred_element_type=jnp.float32) + b2_ref[...]
    h = jnp.maximum(h, 0.0).astype(cd)

    # fc3 : single matmul over the full output width (mean | variance lanes live side by side
    # in the same vregs). Softplus only on the variance lanes via a lane mask (VPU select).
    out = jnp.dot(h, w3_ref[...], preferred_element_type=jnp.float32) + b3_ref[...]
    lane = jax.lax.broadcasted_iota(jnp.int32, out.shape, 1)
    # Numerically stable softplus: max(x,0) + log1p(exp(-|x|))  (1 exp + 1 log1p per element).
    sp = jnp.maximum(out, 0.0) + jnp.log1p(jnp.exp(-jnp.abs(out))) + 1e-6
    out_ref[...] = jnp.where(lane < half, out, sp)


@functools.partial(jax.jit, static_argnames=("tile_b", "compute_dtype"))
def gaussian_mlp_forward(x, params, *, tile_b=2048, compute_dtype=jnp.bfloat16):
    """Forward pass. params = (w1, b1, w2, b2, w3, b3) with weights stored (in, out)."""
    w1, b1, w2, b2, w3, b3 = params
    batch_n, input_dim = x.shape
    hidden = w1.shape[1]
    output_dim = w3.shape[1]
    assert output_dim % 2 == 0, "output_dim must be even (mean/variance split)"
    assert tile_b % 8 == 0, "tile_b must be a multiple of 8"
    half = output_dim // 2

    # Cap the tile so double-buffered, 128-lane-padded x/out blocks stay well inside
    # v7x's 32 MiB scoped VMEM (v5e/v6e have more headroom).
    tile_b = min(tile_b, 4096)

    # Weights cast once in the wrapper (tiny, stay resident in VMEM). Biases stay f32.
    cd = jnp.dtype(compute_dtype)
    w1c, w2c, w3c = (w.astype(cd) for w in (w1, w2, w3))

    # Batch tile: whole batch when it is small; otherwise a large multiple-of-8 tile that still
    # yields >= 2 grid steps so v7x's second TensorCore is never idle.
    if batch_n <= 1024:
        tb = batch_n
    else:
        tb = min(tile_b, _round_up(pl.cdiv(batch_n, 2), 8))
    grid = (pl.cdiv(batch_n, tb),)

    def const_spec(arr):
        # Weights / biases: same block every grid step -> stay resident in VMEM.
        return pl.BlockSpec(arr.shape, lambda i: (0, 0))

    x_spec = pl.BlockSpec((tb, input_dim), lambda i: (i, 0))
    out_spec = pl.BlockSpec((tb, output_dim), lambda i: (i, 0))
    # NOTE: with output_dim=8 the output block is lane-sparse (8 of 128 lanes); if the head width
    # grows in production, keep the combined slab and pad its last dim to a multiple of 128.

    flops = 2 * batch_n * (input_dim * hidden + hidden * hidden + hidden * output_dim)
    bytes_accessed = int(
        x.dtype.itemsize * batch_n * input_dim            # x streamed once (cast happens in-kernel)
        + 4 * batch_n * output_dim                        # f32 output slab
        + sum(int(a.size) * a.dtype.itemsize for a in (w1c, b1, w2c, b2, w3c, b3))
    )
    cost = pl.CostEstimate(flops=flops,
                           transcendentals=2 * batch_n * half,   # exp + log1p per variance element
                           bytes_accessed=bytes_accessed)

    out = pl.pallas_call(
        functools.partial(_gaussian_mlp_kernel, half=half),
        out_shape=jax.ShapeDtypeStruct((batch_n, output_dim), jnp.float32),
        grid=grid,
        in_specs=[x_spec,
                  const_spec(w1c), const_spec(b1),
                  const_spec(w2c), const_spec(b2),
                  const_spec(w3c), const_spec(b3)],
        out_specs=out_spec,
        compiler_params=pltpu.CompilerParams(
            dimension_semantics=("parallel",),
            vmem_limit_bytes=32 * 1024 * 1024,  # not binding at tb<=4096; safe on every generation
        ),
        cost_estimate=cost,
    )(x, w1c, b1, w2c, b2, w3c, b3)

    # Tiny wrapper-side split of the combined slab into the two heads.
    mean = out[:, :half]
    variance = out[:, half:]
    return mean, variance


def init_params(key, input_dim, output_dim):
    """Deterministic init mirroring nn.Linear's uniform(-1/sqrt(fan_in), 1/sqrt(fan_in))."""
    def linear(k, fan_in, fan_out):
        kw, kb = jax.random.split(k)
        bound = 1.0 / jnp.sqrt(fan_in)
        w = jax.random.uniform(kw, (fan_in, fan_out), jnp.float32, -bound, bound)  # (in, out)
        b = jax.random.uniform(kb, (1, fan_out), jnp.float32, -bound, bound)
        return w, b

    k1, k2, k3 = jax.random.split(key, 3)
    w1, b1 = linear(k1, input_dim, 64)
    w2, b2 = linear(k2, 64, 64)
    w3, b3 = linear(k3, 64, output_dim)
    return (w1, b1, w2, b2, w3, b3)


def _reference(x, params):
    w1, b1, w2, b2, w3, b3 = params
    h = jnp.maximum(x @ w1 + b1, 0.0)
    h = jnp.maximum(h @ w2 + b2, 0.0)
    out = (h @ w3 + b3).reshape(x.shape[0], 2, -1)
    return out[:, 0, :], jax.nn.softplus(out[:, 1, :]) + 1e-6


if __name__ == "__main__":
    key = jax.random.PRNGKey(0)
    kx, kp, kx2, kx3 = jax.random.split(key, 4)

    input_dim = 16
    output_dim = 8  # -> mean / variance each of dim 4

    params = init_params(kp, input_dim, output_dim)

    # --- small-shape check, f32 operands (single grid point, tight tolerance) ---
    batch_n = 2
    x = jax.random.normal(kx, (batch_n, input_dim), dtype=jnp.float32)
    mean, variance = gaussian_mlp_forward(x, params, compute_dtype=jnp.float32)
    jax.block_until_ready((mean, variance))

    ref_mean, ref_var = _reference(x, params)
    assert mean.shape == (batch_n, output_dim // 2)
    assert variance.shape == (batch_n, output_dim // 2)
    assert jnp.allclose(mean, ref_mean, atol=1e-5, rtol=1e-5)
    assert jnp.allclose(variance, ref_var, atol=1e-5, rtol=1e-5)
    assert jnp.all(variance > 0)

    # --- larger batch, f32, non-divisible by the tile (partial last tile + 2-step grid) ---
    batch_odd = 1003
    x_odd = jax.random.normal(kx2, (batch_odd, input_dim), dtype=jnp.float32)
    mean_o, var_o = gaussian_mlp_forward(x_odd, params, compute_dtype=jnp.float32)
    jax.block_until_ready((mean_o, var_o))
    ref_mean_o, ref_var_o = _reference(x_odd, params)
    assert jnp.all(jnp.isfinite(mean_o)) and jnp.all(jnp.isfinite(var_o))
    assert jnp.allclose(mean_o, ref_mean_o, atol=1e-4, rtol=1e-4)
    assert jnp.allclose(var_o, ref_var_o, atol=1e-4, rtol=1e-4)

    # --- default bf16 matmul operands (f32 accumulation), looser tolerance ---
    batch_big = 4096
    x_big = jax.random.normal(kx3, (batch_big, input_dim), dtype=jnp.float32)
    mean_b, var_b = gaussian_mlp_forward(x_big, params)  # compute_dtype=bf16 default
    jax.block_until_ready((mean_b, var_b))
    ref_mean_b, ref_var_b = _reference(x_big, params)
    assert jnp.all(jnp.isfinite(mean_b)) and jnp.all(jnp.isfinite(var_b))
    assert jnp.allclose(mean_b, ref_mean_b, atol=5e-2, rtol=5e-2)
    assert jnp.allclose(var_b, ref_var_b, atol=5e-2, rtol=5e-2)
    assert jnp.all(var_b > 0)

    print("KERNEL_OK")
</pallas_src>

<mosaic_0001>
module attributes {stable_mosaic.version = 11 : i64} {
  func.func @_gaussian_mlp_kernel(%arg0: i32, %arg1: memref<2x16xf32, #tpu.memory_space<vmem>>, %arg2: memref<16x64xf32, #tpu.memory_space<vmem>>, %arg3: memref<1x64xf32, #tpu.memory_space<vmem>>, %arg4: memref<64x64xf32, #tpu.memory_space<vmem>>, %arg5: memref<1x64xf32, #tpu.memory_space<vmem>>, %arg6: memref<64x8xf32, #tpu.memory_space<vmem>>, %arg7: memref<1x8xf32, #tpu.memory_space<vmem>>, %arg8: memref<2x8xf32, #tpu.memory_space<vmem>>) attributes {dimension_semantics = [#tpu.dimension_semantics<parallel>], iteration_bounds = array<i64: 1>, scalar_prefetch = 0 : i64, scratch_operands = 0 : i64, tpu.core_type = #tpu.core_type<tc>, window_params = [{transform_indices = @transform_0, window_bounds = array<i64: 2, 16>}, {pipeline_mode = #tpu.pipeline_mode<synchronous>, transform_indices = @transform_1, window_bounds = array<i64: 16, 64>}, {pipeline_mode = #tpu.pipeline_mode<synchronous>, transform_indices = @transform_2, window_bounds = array<i64: 1, 64>}, {pipeline_mode = #tpu.pipeline_mode<synchronous>, transform_indices = @transform_3, window_bounds = array<i64: 64, 64>}, {pipeline_mode = #tpu.pipeline_mode<synchronous>, transform_indices = @transform_4, window_bounds = array<i64: 1, 64>}, {pipeline_mode = #tpu.pipeline_mode<synchronous>, transform_indices = @transform_5, window_bounds = array<i64: 64, 8>}, {pipeline_mode = #tpu.pipeline_mode<synchronous>, transform_indices = @transform_6, window_bounds = array<i64: 1, 8>}, {transform_indices = @transform_7, window_bounds = array<i64: 2, 8>}]} {
    %c0 = arith.constant 0 : index
    %c0_0 = arith.constant 0 : index
    %0 = vector.load %arg1[%c0, %c0_0] : memref<2x16xf32, #tpu.memory_space<vmem>>, vector<2x16xf32>
    %c0_1 = arith.constant 0 : index
    %c0_2 = arith.constant 0 : index
    %1 = vector.load %arg2[%c0_1, %c0_2] : memref<16x64xf32, #tpu.memory_space<vmem>>, vector<16x64xf32>
    %cst = arith.constant dense<0.000000e+00> : vector<2x64xf32>
    %2 = tpu.matmul %0, %1, %cst {dimension_numbers = #tpu.dot_dimension_numbers<[1], [0], [0], [1], [0, 0, 1, 1], [], []>} : vector<2x16xf32>, vector<16x64xf32>, vector<2x64xf32> -> vector<2x64xf32>
    %c0_3 = arith.constant 0 : index
    %c0_4 = arith.constant 0 : index
    %3 = vector.load %arg3[%c0_3, %c0_4] : memref<1x64xf32, #tpu.memory_space<vmem>>, vector<1x64xf32>
    %4 = vector.broadcast %3 : vector<1x64xf32> to vector<2x64xf32>
    %5 = arith.addf %2, %4 : vector<2x64xf32>
    %cst_5 = arith.constant 0.000000e+00 : f32
    %6 = vector.broadcast %cst_5 : f32 to vector<2x64xf32>
    %7 = arith.maximumf %5, %6 : vector<2x64xf32>
    %c0_6 = arith.constant 0 : index
    %c0_7 = arith.constant 0 : index
    %8 = vector.load %arg4[%c0_6, %c0_7] : memref<64x64xf32, #tpu.memory_space<vmem>>, vector<64x64xf32>
    %cst_8 = arith.constant dense<0.000000e+00> : vector<2x64xf32>
    %9 = tpu.matmul %7, %8, %cst_8 {dimension_numbers = #tpu.dot_dimension_numbers<[1], [0], [0], [1], [0, 0, 1, 1], [], []>} : vector<2x64xf32>, vector<64x64xf32>, vector<2x64xf32> -> vector<2x64xf32>
    %c0_9 = arith.constant 0 : index
    %c0_10 = arith.constant 0 : index
    %10 = vector.load %arg5[%c0_9, %c0_10] : memref<1x64xf32, #tpu.memory_space<vmem>>, vector<1x64xf32>
    %11 = vector.broadcast %10 : vector<1x64xf32> to vector<2x64xf32>
    %12 = arith.addf %9, %11 : vector<2x64xf32>
    %cst_11 = arith.constant 0.000000e+00 : f32
    %13 = vector.broadcast %cst_11 : f32 to vector<2x64xf32>
    %14 = arith.maximumf %12, %13 : vector<2x64xf32>
    %c0_12 = arith.constant 0 : index
    %c0_13 = arith.constant 0 : index
    %15 = vector.load %arg6[%c0_12, %c0_13] : memref<64x8xf32, #tpu.memory_space<vmem>>, vector<64x8xf32>
    %cst_14 = arith.constant dense<0.000000e+00> : vector<2x8xf32>
    %16 = tpu.matmul %14, %15, %cst_14 {dimension_numbers = #tpu.dot_dimension_numbers<[1], [0], [0], [1], [0, 0, 1, 1], [], []>} : vector<2x64xf32>, vector<64x8xf32>, vector<2x8xf32> -> vector<2x8xf32>
    %c0_15 = arith.constant 0 : index
    %c0_16 = arith.constant 0 : index
    %17 = vector.load %arg7[%c0_15, %c0_16] : memref<1x8xf32, #tpu.memory_space<vmem>>, vector<1x8xf32>
    %18 = vector.broadcast %17 : vector<1x8xf32> to vector<2x8xf32>
    %19 = arith.addf %16, %18 : vector<2x8xf32>
    %20 = tpu.iota {dimensions = array<i32: 1>} : vector<2x8xi32>
    %cst_17 = arith.constant 0.000000e+00 : f32
    %21 = vector.broadcast %cst_17 : f32 to vector<2x8xf32>
    %22 = arith.maximumf %19, %21 : vector<2x8xf32>
    %23 = math.absf %19 : vector<2x8xf32>
    %cst_18 = arith.constant 0.000000e+00 : f32
    %24 = vector.broadcast %cst_18 : f32 to vector<2x8xf32>
    %25 = arith.subf %24, %23 : vector<2x8xf32>
    %26 = math.exp %25 : vector<2x8xf32>
    %27 = math.log1p %26 : vector<2x8xf32>
    %28 = arith.addf %22, %27 : vector<2x8xf32>
    %cst_19 = arith.constant 9.99999997E-7 : f32
    %29 = vector.broadcast %cst_19 : f32 to vector<2x8xf32>
    %30 = arith.addf %28, %29 : vector<2x8xf32>
    %c4_i32 = arith.constant 4 : i32
    %31 = vector.broadcast %c4_i32 : i32 to vector<2x8xi32>
    %32 = arith.cmpi slt, %20, %31 : vector<2x8xi32>
    %33 = arith.select %32, %19, %30 : vector<2x8xi1>, vector<2x8xf32>
    %c0_20 = arith.constant 0 : index
    %c0_21 = arith.constant 0 : index
    %34 = vector.load %arg8[%c0_20, %c0_21] : memref<2x8xf32, #tpu.memory_space<vmem>>, vector<2x8xf32>
    tpu.vector_store %arg8[%c0_20, %c0_21], %33 {strides = array<i32>} : memref<2x8xf32, #tpu.memory_space<vmem>>, vector<2x8xf32>,
    return
  }
  func.func @transform_0(%arg0: i32) -> (i32, i32) {
    %c0_i32 = arith.constant 0 : i32
    %c0_i32_0 = arith.constant 0 : i32
    return %arg0, %c0_i32 : i32, i32
  }
  func.func @transform_1(%arg0: i32) -> (i32, i32) {
    %c0_i32 = arith.constant 0 : i32
    %c0_i32_0 = arith.constant 0 : i32
    %c0_i32_1 = arith.constant 0 : i32
    return %c0_i32, %c0_i32_0 : i32, i32
  }
  func.func @transform_2(%arg0: i32) -> (i32, i32) {
    %c0_i32 = arith.constant 0 : i32
    %c0_i32_0 = arith.constant 0 : i32
    %c0_i32_1 = arith.constant 0 : i32
    return %c0_i32, %c0_i32_0 : i32, i32
  }
  func.func @transform_3(%arg0: i32) -> (i32, i32) {
    %c0_i32 = arith.constant 0 : i32
    %c0_i32_0 = arith.constant 0 : i32
    %c0_i32_1 = arith.constant 0 : i32
    return %c0_i32, %c0_i32_0 : i32, i32
  }
  func.func @transform_4(%arg0: i32) -> (i32, i32) {
    %c0_i32 = arith.constant 0 : i32
    %c0_i32_0 = arith.constant 0 : i32
    %c0_i32_1 = arith.constant 0 : i32
    return %c0_i32, %c0_i32_0 : i32, i32
  }
  func.func @transform_5(%arg0: i32) -> (i32, i32) {
    %c0_i32 = arith.constant 0 : i32
    %c0_i32_0 = arith.constant 0 : i32
    %c0_i32_1 = arith.constant 0 : i32
    return %c0_i32, %c0_i32_0 : i32, i32
  }
  func.func @transform_6(%arg0: i32) -> (i32, i32) {
    %c0_i32 = arith.constant 0 : i32
    %c0_i32_0 = arith.constant 0 : i32
    %c0_i32_1 = arith.constant 0 : i32
    return %c0_i32, %c0_i32_0 : i32, i32
  }
  func.func @transform_7(%arg0: i32) -> (i32, i32) {
    %c0_i32 = arith.constant 0 : i32
    %c0_i32_0 = arith.constant 0 : i32
    return %arg0, %c0_i32 : i32, i32
  }
}

</mosaic_0001>

<bundles_post_ra>
// kernel: gaussian_mlp_forward.1
= control target key start
LH: loop header
LB: loop body
LE: loop exit
PB: predicated region body
PF: predicated region fallthrough
CT: control target
= control target key end

     0   :  { %12 = vsyncpa [#allocation3], 0  ;;  %s212_s27 = smov [#allocation2]   ;;  %s213_s29 = smov 128   ;;  %s321_s0 = inlined_call_operand.vmem [shape: f32[2,16], index: 0, kind: input, shape index: {}]   ;;  %s322_s1 = inlined_call_operand.hbm [shape: f32[16,64], index: 1, kind: input, shape index: {}]   ;;  %s323_s2 = inlined_call_operand.vmem [shape: f32[1,64], index: 2, kind: input, shape index: {}]   ;;  %s324_s3 = inlined_call_operand.vmem [shape: f32[64,64], index: 3, kind: input, shape index: {}]   ;;  %s325_s4 = inlined_call_operand.vmem [shape: f32[1,64], index: 4, kind: input, shape index: {}]   ;;  %s326_s5 = inlined_call_operand.vmem [shape: f32[64,8], index: 5, kind: input, shape index: {}]   ;;  %s327_s6 = inlined_call_operand.vmem [shape: f32[1,8], index: 6, kind: input, shape index: {}]   ;;  %s328_s7 = inlined_call_operand.vmem [shape: f32[2,8], index: 7, kind: output, shape index: {}]  }
   0x1   :  { %s19_s26 = sshll.u32 %s322_s1, 4  ;;  %s21_s28 = sshll.u32 %s212_s27, 4  ;;  %s20_s26 = int_to_ptr.hbm [resolvable:$true] %s19_s26  ;;  %s22_s28 = int_to_ptr.vmem [resolvable:$true] %s21_s28 }
   0x2   :  { %s214_s30 = smov 8  }
   0x3   :  { %27 = dma.hbm_to_vmem [thread:$0]  %s20_s26, 256, %s22_s28, [#allocation3], %s213_s29, %s213_s29, %s214_s30  }
   0x4   :  { %210 = dma.done.wait [#allocation3], 256  }
   0x5   :  { %211 = vsyncadd [#allocation3], 4294967040  ;;  %v44_v0 = vld [vmem:[#allocation2 + $0x8] sm:$0xff]  ;;  %v43_v1 = vld [vmem:[#allocation2] sm:$0xff]  ;;  %vm49_vm0 = vcmask 130048   ;;  %vm86_vm1 = vcmask 523264   ;;  %v146_v36 = vlaneseq }
   0x6   :  { %67 = vmatpush.msra.mxu0 %v44_v0  ;;  %v42_v2 = vld [vmem:[%s321_s0] sm:$0x3]  ;;  %v81_v3 = vld [vmem:[%s324_s3 + $0x38] sm:$0xff]  ;;  %v80_v4 = vld [vmem:[%s324_s3 + $0x30] sm:$0xff]  ;;  %vm166_vm4 = vcmask 58368  }
   0x7   :  { %98 = vmatpush.msra.mxu1 %v81_v3  ;;  %v79_v5 = vld [vmem:[%s324_s3 + $0x28] sm:$0xff]  ;;  %v78_v6 = vld [vmem:[%s324_s3 + $0x20] sm:$0xff]  ;;  %v77_v7 = vld [vmem:[%s324_s3 + $0x18] sm:$0xff]  ;;  %v147_v40 = vand.u32 127, %v146_v36 }
   0x8   :  { %68 = vmatpush.msra.mxu0 %v43_v1  ;;  %v76_v8 = vld [vmem:[%s324_s3 + $0x10] sm:$0xff]  ;;  %v75_v9 = vld [vmem:[%s324_s3 + $0x8] sm:$0xff]  ;;  %v74_v10 = vld [vmem:[%s324_s3] sm:$0xff] }
   0x9   :  { %173 = vmatmul.msk.f32.vlgmr.msra.gmra.mxu0 %vm49_vm0, %v42_v2  ;;  %99 = vmatpush.msra.mxu1 %v80_v4  ;;  %v118_v11 = vld [vmem:[%s326_s5 + $0x38] sm:$0xff]  ;;  %v117_v12 = vld [vmem:[%s326_s5 + $0x30] sm:$0xff]  ;;  %v116_v13 = vld [vmem:[%s326_s5 + $0x28] sm:$0xff]  ;;  %vm164_vm3 = vcmp.lt.s32.totalorder %v147_v40, 4 }
   0xa   :  { %134 = vmatpush.msra.mxu2 %v118_v11  ;;  %v115_v14 = vld [vmem:[%s326_s5 + $0x20] sm:$0xff]  ;;  %v114_v15 = vld [vmem:[%s326_s5 + $0x18] sm:$0xff]  ;;  %v113_v20 = vld [vmem:[%s326_s5 + $0x10] sm:$0xff] }
   0xb   :  { %100 = vmatpush.msra.mxu1 %v79_v5  ;;  %v179_v16 = vld [vmem:[%s323_s2] ss:$0 sm:$0xff]  ;;  %v112_v21 = vld [vmem:[%s326_s5 + $0x8] sm:$0xff] }
   0xc   :  { %135 = vmatpush.msra.mxu2 %v117_v12  ;;  %v111_v22 = vld [vmem:[%s326_s5] sm:$0xff] }
   0xd   :  { %101 = vmatpush.msra.mxu1 %v78_v6  ;;  %v180_v23 = vld [vmem:[%s325_s4] ss:$0 sm:$0xff] }
   0xe   :  { %136 = vmatpush.msra.mxu2 %v116_v13  ;;  %v181_v27 = vld [vmem:[%s327_s6] ss:$0 sm:$0xff] }
   0xf   :  { %102 = vmatpush.msra.mxu1 %v77_v7 }
  0x10   :  { %137 = vmatpush.msra.mxu2 %v115_v14 }
  0x11   :  { %103 = vmatpush.msra.mxu1 %v76_v8 }
  0x12   :  { %138 = vmatpush.msra.mxu2 %v114_v15 }
  0x13   :  { %104 = vmatpush.msra.mxu1 %v75_v9 }
  0x14   :  { %139 = vmatpush.msra.mxu2 %v113_v20 }
  0x15   :  { %105 = vmatpush.msra.mxu1 %v74_v10 }
  0x16   :  { %140 = vmatpush.msra.mxu2 %v112_v21 }
  0x18   :  { %141 = vmatpush.msra.mxu2 %v111_v22 }
  0x86   :  { %v70_v17 = vpop.f32.mrf.mxu0 }
  0x87   :  { %v71_v18 = vadd.f32 %v179_v16, %v70_v17 }
  0x89   :  { %v73_v19 = vmax.f32 %v71_v18, 0.0 }
  0x8b   :  { %174 = vmatmul.msk.f32.vlgmr.msra.gmra.mxu1 %vm86_vm1, %v73_v19 }
 0x108   :  { %v107_v24 = vpop.f32.mrf.mxu1 }
 0x109   :  { %v108_v25 = vadd.f32 %v180_v23, %v107_v24 }
 0x10b   :  { %v110_v26 = vmax.f32 %v108_v25, 0.0 }
 0x10d   :  { %175 = vmatmul.msk.f32.vlgmr.msra.gmra.mxu2 %vm86_vm1, %v110_v26 }
 0x190   :  { %v143_v28 = vpop.f32.mrf.mxu2 }
 0x191   :  { %v144_v29 = vadd.f32 %v181_v27, %v143_v28 }
 0x193   :  { %v149_v30 = vand.u32 2147483647, %v144_v29  ;;  %v148_v43 = vmax.f32 %v144_v29, 0.0 }
 0x195   :  { %v150_v31 = vsub.f32 0.0, %v149_v30 }
 0x197   :  { %v151_v32 = vmul.f32 1.442695, %v150_v31 }
 0x199   :  { %182 = vpow2.f32 %v151_v32 }
 0x19f   :  { %v183_v33 = vpop.eup %182 }
 0x1a0   :  { %v153_v34 = vadd.f32 1.0, %v183_v33  ;;  %v156_v35 = vmul.f32 -0.5, %v183_v33  ;;  %v159_v38 = vand.u32 2147483647, %v183_v33 }
 0x1a2   :  { %184 = vlog2.f32 %v153_v34  ;;  %v157_v37 = vadd.f32 1.0, %v156_v35  ;;  %vm160_vm2 = vcmp.lt.f32.partialorder %v159_v38, 0.0004427343 }
 0x1a4   :  { %v158_v42 = vmul.f32 %v183_v33, %v157_v37 }
 0x1a8   :  { %v185_v39 = vpop.eup %184 }
 0x1a9   :  { %v155_v41 = vmul.f32 0.6931472, %v185_v39 }
 0x1ab   :  { %v161_v44 = vsel %vm160_vm2, %v158_v42, %v155_v41 }
 0x1ac   :  { %v162_v45 = vadd.f32 %v161_v44, %v148_v43 }
 0x1ae   :  { %v163_v46 = vadd.f32 1e-06, %v162_v45 }
 0x1b0   :  { %v165_v47 = vsel %vm164_vm3, %v144_v29, %v163_v46 }
 0x1b1   :  { %167 = vst.msk [vmem:[%s328_s7] sm:$0x3] %vm166_vm4, %v165_v47 }
 0x1b2   :  { %172 = vsyncpa [#allocation3], 1 }

</bundles_post_ra>
